<compile_context>
chip_gen: v5e
topology: v5e:2x2
jax: 0.10.0
libtpu: 0.0.40
codegen_flags: <defaults>
</compile_context>

<pallas_src>
import functools

import jax
import jax.numpy as jnp
from jax.experimental import pallas as pl
from jax.experimental.pallas import tpu as pltpu


def _round_up(v, m):
    return (v + m - 1) // m * m


def _pad_to(a, shape):
    return jnp.pad(a, [(0, t - s) for s, t in zip(a.shape, shape)])


def _graphconv_kernel(adj_ref, feat_ref, w_ref, b_ref, o_ref, *, apply_relu):
    # Aggregate-first per row tile: after padding the feature dims are all 128,
    # so (A_tile @ feat) @ W costs the same MXU work as A_tile @ (feat @ W) and
    # avoids a separate transform kernel.
    agg = jnp.dot(adj_ref[...], feat_ref[...],
                  preferred_element_type=jnp.float32)          # bf16 MXU, f32 acc
    out = jnp.dot(agg, w_ref[...],
                  preferred_element_type=jnp.float32) + b_ref[...]
    if apply_relu:
        out = jnp.maximum(out, 0.0)
    o_ref[...] = out.astype(o_ref.dtype)


def _graphconv(adj_bf16, feat_bf16, w, b, *, apply_relu, tm):
    """One GraphConv layer: out = relu?(A_hat @ feat @ W + b), row-tiled over A_hat."""
    n_p = adj_bf16.shape[0]
    f_in_p = feat_bf16.shape[1]
    f_out_p = w.shape[1]
    grid = (n_p // tm,)

    # Cost estimate with consistently-padded shapes (ops actually executed).
    flops = 2 * n_p * n_p * f_in_p + 2 * n_p * f_in_p * f_out_p
    bytes_accessed = (2 * adj_bf16.size + 2 * feat_bf16.size
                      + 4 * (w.size + b.size + n_p * f_out_p))

    # Explicit VMEM budget: double-buffered adj row tile + resident feat/W/b +
    # double-buffered out tile, 2x headroom, clamped to [16 MiB, 64 MiB]
    # (64 MiB = v7x physical VMEM; 16 MiB >= default scoped limit on v5e).
    vmem_bytes = (2 * tm * n_p * 2                # adj tile, bf16, double-buffered
                  + 2 * n_p * f_in_p * 2          # feat, bf16
                  + 2 * f_in_p * f_out_p * 4      # W, f32
                  + 2 * f_out_p * 4               # b, f32
                  + 2 * tm * f_out_p * 4)         # out tile, f32
    vmem_limit = int(min(64 << 20, max(16 << 20, 2 * vmem_bytes)))

    return pl.pallas_call(
        functools.partial(_graphconv_kernel, apply_relu=apply_relu),
        out_shape=jax.ShapeDtypeStruct((n_p, f_out_p), jnp.float32),
        grid=grid,
        in_specs=[
            pl.BlockSpec((tm, n_p), lambda i: (i, 0)),         # A_hat row tile
            pl.BlockSpec((n_p, f_in_p), lambda i: (0, 0)),     # resident features
            pl.BlockSpec((f_in_p, f_out_p), lambda i: (0, 0)),  # resident weight
            pl.BlockSpec((1, f_out_p), lambda i: (0, 0)),       # resident bias
        ],
        out_specs=pl.BlockSpec((tm, f_out_p), lambda i: (i, 0)),
        compiler_params=pltpu.CompilerParams(
            dimension_semantics=("parallel",),
            vmem_limit_bytes=vmem_limit),
        cost_estimate=pl.CostEstimate(
            flops=flops, transcendentals=0, bytes_accessed=bytes_accessed),
    )(adj_bf16, feat_bf16, w, b)


def gcn_forward(norm_adj, x, params, *, row_tile=256):
    """2-layer GCN forward. Returns (N, num_classes) float32 logits."""
    n, f_in = x.shape
    hidden = params["w1"].shape[1]
    classes = params["w2"].shape[1]

    tm = row_tile
    n_p = _round_up(n, max(256, tm))
    f_in_p = _round_up(f_in, 128)
    hid_p = _round_up(hidden, 128)
    cls_p = _round_up(classes, 128)

    adj_p = _pad_to(norm_adj.astype(jnp.float32), (n_p, n_p)).astype(jnp.bfloat16)
    x_p = _pad_to(x.astype(jnp.float32), (n_p, f_in_p)).astype(jnp.bfloat16)
    w1_p = _pad_to(params["w1"].astype(jnp.float32), (f_in_p, hid_p))
    b1_p = _pad_to(params["b1"].astype(jnp.float32), (1, hid_p))
    w2_p = _pad_to(params["w2"].astype(jnp.float32), (hid_p, cls_p))
    b2_p = _pad_to(params["b2"].astype(jnp.float32), (1, cls_p))

    # Layer 1 (ReLU fused into the kernel epilogue).
    h = _graphconv(adj_p, x_p, w1_p, b1_p, apply_relu=True, tm=tm)   # (n_p, hid_p) f32
    # Layer 2 (h re-cast to bf16 for the aggregation MXU inputs).
    out = _graphconv(adj_p, h.astype(jnp.bfloat16), w2_p, b2_p,
                     apply_relu=False, tm=tm)                        # (n_p, cls_p) f32
    return out[:n, :classes]


def build_norm_adj(src, dst, num_nodes):
    """Dense D_in^{-1/2} A D_out^{-1/2}, matching DGL GraphConv norm='both'."""
    adj = jnp.zeros((num_nodes, num_nodes), jnp.float32)
    adj = adj.at[dst, src].add(1.0)                 # row = dst, col = src
    out_deg = jnp.maximum(adj.sum(axis=0), 1.0)     # per-source out-degree
    in_deg = jnp.maximum(adj.sum(axis=1), 1.0)      # per-dest in-degree
    return (in_deg[:, None] ** -0.5) * adj * (out_deg[None, :] ** -0.5)


if __name__ == "__main__":
    # Shapes implied by the original script: nn.Embedding(53, 5) -> GCN(5, hidden, classes)
    N = 53
    IN_FEATS = 5
    HIDDEN = 16
    NUM_CLASSES = 3
    NUM_EDGES = 120

    key = jax.random.PRNGKey(0)
    k_emb, k_src, k_dst, k_w1, k_b1, k_w2, k_b2 = jax.random.split(key, 7)

    # Synthetic graph (deterministic) in place of the CSV-built heterograph.
    src = jax.random.randint(k_src, (NUM_EDGES,), 0, N)
    dst = jax.random.randint(k_dst, (NUM_EDGES,), 0, N)
    norm_adj = build_norm_adj(src, dst, N)

    # "Embedding weights" as node input features (53, 5).
    x = jax.random.normal(k_emb, (N, IN_FEATS), jnp.float32)

    def glorot(k, fan_in, fan_out):
        limit = (6.0 / (fan_in + fan_out)) ** 0.5
        return jax.random.uniform(k, (fan_in, fan_out), jnp.float32, -limit, limit)

    params = {
        "w1": glorot(k_w1, IN_FEATS, HIDDEN),
        "b1": jnp.zeros((1, HIDDEN), jnp.float32),
        "w2": glorot(k_w2, HIDDEN, NUM_CLASSES),
        "b2": jnp.zeros((1, NUM_CLASSES), jnp.float32),
    }

    out = gcn_forward(norm_adj, x, params)
    out = jax.block_until_ready(out)
    assert out.shape == (N, NUM_CLASSES)

    # Tight reference: same bf16 quantization of adj / x / h, f32 accumulation.
    adj_q = norm_adj.astype(jnp.bfloat16).astype(jnp.float32)
    x_q = x.astype(jnp.bfloat16).astype(jnp.float32)
    h_ref = jnp.maximum(adj_q @ x_q @ params["w1"] + params["b1"], 0.0)
    h_q = h_ref.astype(jnp.bfloat16).astype(jnp.float32)
    out_ref = adj_q @ h_q @ params["w2"] + params["b2"]
    assert jnp.allclose(out, out_ref, atol=5e-3, rtol=5e-3), \
        float(jnp.max(jnp.abs(out - out_ref)))

    # Loose sanity check against the pure-f32 math (covers bf16 quantization).
    h_f32 = jnp.maximum(norm_adj @ x @ params["w1"] + params["b1"], 0.0)
    out_f32 = norm_adj @ h_f32 @ params["w2"] + params["b2"]
    assert jnp.allclose(out, out_f32, atol=1e-1, rtol=1e-1), \
        float(jnp.max(jnp.abs(out - out_f32)))

    print("KERNEL_OK")
</pallas_src>

<mosaic_0001>
module attributes {stable_mosaic.version = 11 : i64} {
  func.func @_graphconv_kernel(%arg0: i32, %arg1: memref<256x256xbf16, #tpu.memory_space<vmem>>, %arg2: memref<256x128xbf16, #tpu.memory_space<vmem>>, %arg3: memref<128x128xf32, #tpu.memory_space<vmem>>, %arg4: memref<1x128xf32, #tpu.memory_space<vmem>>, %arg5: memref<256x128xf32, #tpu.memory_space<vmem>>) attributes {dimension_semantics = [#tpu.dimension_semantics<parallel>], iteration_bounds = array<i64: 1>, scalar_prefetch = 0 : i64, scratch_operands = 0 : i64, tpu.core_type = #tpu.core_type<tc>, window_params = [{transform_indices = @transform_0, window_bounds = array<i64: 256, 256>}, {pipeline_mode = #tpu.pipeline_mode<synchronous>, transform_indices = @transform_1, window_bounds = array<i64: 256, 128>}, {pipeline_mode = #tpu.pipeline_mode<synchronous>, transform_indices = @transform_2, window_bounds = array<i64: 128, 128>}, {pipeline_mode = #tpu.pipeline_mode<synchronous>, transform_indices = @transform_3, window_bounds = array<i64: 1, 128>}, {transform_indices = @transform_4, window_bounds = array<i64: 256, 128>}]} {
    %c0 = arith.constant 0 : index
    %c0_0 = arith.constant 0 : index
    %0 = vector.load %arg1[%c0, %c0_0] : memref<256x256xbf16, #tpu.memory_space<vmem>>, vector<256x256xbf16>
    %c0_1 = arith.constant 0 : index
    %c0_2 = arith.constant 0 : index
    %1 = vector.load %arg2[%c0_1, %c0_2] : memref<256x128xbf16, #tpu.memory_space<vmem>>, vector<256x128xbf16>
    %cst = arith.constant dense<0.000000e+00> : vector<256x128xf32>
    %2 = tpu.matmul %0, %1, %cst {dimension_numbers = #tpu.dot_dimension_numbers<[1], [0], [0], [1], [0, 0, 1, 1], [], []>} : vector<256x256xbf16>, vector<256x128xbf16>, vector<256x128xf32> -> vector<256x128xf32>
    %c0_3 = arith.constant 0 : index
    %c0_4 = arith.constant 0 : index
    %3 = vector.load %arg3[%c0_3, %c0_4] : memref<128x128xf32, #tpu.memory_space<vmem>>, vector<128x128xf32>
    %cst_5 = arith.constant dense<0.000000e+00> : vector<256x128xf32>
    %4 = tpu.matmul %2, %3, %cst_5 {dimension_numbers = #tpu.dot_dimension_numbers<[1], [0], [0], [1], [0, 0, 1, 1], [], []>} : vector<256x128xf32>, vector<128x128xf32>, vector<256x128xf32> -> vector<256x128xf32>
    %c0_6 = arith.constant 0 : index
    %c0_7 = arith.constant 0 : index
    %5 = vector.load %arg4[%c0_6, %c0_7] : memref<1x128xf32, #tpu.memory_space<vmem>>, vector<1x128xf32>
    %6 = vector.broadcast %5 : vector<1x128xf32> to vector<256x128xf32>
    %7 = arith.addf %4, %6 : vector<256x128xf32>
    %cst_8 = arith.constant 0.000000e+00 : f32
    %8 = vector.broadcast %cst_8 : f32 to vector<256x128xf32>
    %9 = arith.maximumf %7, %8 : vector<256x128xf32>
    %c0_9 = arith.constant 0 : index
    %c0_10 = arith.constant 0 : index
    %10 = vector.load %arg5[%c0_9, %c0_10] : memref<256x128xf32, #tpu.memory_space<vmem>>, vector<256x128xf32>
    tpu.vector_store %arg5[%c0_9, %c0_10], %9 {strides = array<i32>} : memref<256x128xf32, #tpu.memory_space<vmem>>, vector<256x128xf32>,
    return
  }
  func.func @transform_0(%arg0: i32) -> (i32, i32) {
    %c0_i32 = arith.constant 0 : i32
    %c0_i32_0 = arith.constant 0 : i32
    return %arg0, %c0_i32 : i32, i32
  }
  func.func @transform_1(%arg0: i32) -> (i32, i32) {
    %c0_i32 = arith.constant 0 : i32
    %c0_i32_0 = arith.constant 0 : i32
    %c0_i32_1 = arith.constant 0 : i32
    return %c0_i32, %c0_i32_0 : i32, i32
  }
  func.func @transform_2(%arg0: i32) -> (i32, i32) {
    %c0_i32 = arith.constant 0 : i32
    %c0_i32_0 = arith.constant 0 : i32
    %c0_i32_1 = arith.constant 0 : i32
    return %c0_i32, %c0_i32_0 : i32, i32
  }
  func.func @transform_3(%arg0: i32) -> (i32, i32) {
    %c0_i32 = arith.constant 0 : i32
    %c0_i32_0 = arith.constant 0 : i32
    %c0_i32_1 = arith.constant 0 : i32
    return %c0_i32, %c0_i32_0 : i32, i32
  }
  func.func @transform_4(%arg0: i32) -> (i32, i32) {
    %c0_i32 = arith.constant 0 : i32
    %c0_i32_0 = arith.constant 0 : i32
    return %arg0, %c0_i32 : i32, i32
  }
}

</mosaic_0001>

<bundles_post_ra>
// kernel: tpu_custom_call.1
= control target key start
LH: loop header
LB: loop body
LE: loop exit
PB: predicated region body
PF: predicated region fallthrough
CT: control target
= control target key end

     0   :  { %9 = vsyncpa [#allocation3], 0  ;;  %s1260_s0 = inlined_call_operand.hbm [shape: bf16[256,256], index: 0, kind: input, shape index: {}]   ;;  %s1261_s1 = inlined_call_operand.hbm [shape: bf16[256,128], index: 1, kind: input, shape index: {}]   ;;  %s1262_s2 = inlined_call_operand.hbm [shape: f32[128,128], index: 2, kind: input, shape index: {}]   ;;  %s1263_s3 = inlined_call_operand.vmem [shape: f32[1,128], index: 3, kind: input, shape index: {}]   ;;  %s1264_s4 = inlined_call_operand.hbm [shape: f32[256,128], index: 4, kind: output, shape index: {}]  }
   0x1   :  { %10 = vsyncpa [#allocation6], 0  ;;  %s29_s17 = sshll.u32 %s1261_s1, 4  ;;  %s30_s17 = int_to_ptr.hbm [resolvable:$true] %s29_s17 }
   0x2   :  { %11 = vsyncpa [#allocation4], 0  ;;  %s1163_s18 = smov [#allocation5]   ;;  %s16_s22 = sshll.u32 %s1260_s0, 4  ;;  %s17_s22 = int_to_ptr.hbm [resolvable:$true] %s16_s22 }
   0x3   :  { %s31_s19 = sshll.u32 %s1163_s18, 4  ;;  %s1164_s23 = smov 64   ;;  %s32_s19 = int_to_ptr.vmem [resolvable:$true] %s31_s19 }
   0x4   :  { %s1165_s24 = smov 4   ;;  %s1166_s25 = smov [#allocation2]  }
   0x5   :  { %37 = dma.hbm_to_vmem [thread:$0]  %s30_s17, 2048, %s32_s19, [#allocation6], %s1164_s23, %s1164_s23, %s1165_s24  }
   0x6   :  { %s18_s26 = sshll.u32 %s1166_s25, 4  ;;  %s1167_s27 = smov 128   ;;  %s19_s26 = int_to_ptr.vmem [resolvable:$true] %s18_s26 }
   0x7   :  { %s1168_s28 = smov 8   ;;  %s42_s30 = sshll.u32 %s1262_s2, 4  ;;  %s43_s30 = int_to_ptr.hbm [resolvable:$true] %s42_s30 }
   0x8   :  { %24 = dma.hbm_to_vmem [thread:$0]  %s17_s22, 4096, %s19_s26, [#allocation3], %s1167_s27, %s1167_s27, %s1168_s28  }
   0x9   :  { %s1169_s5 = smov [#allocation7]  }
   0xa   :  { %s44_s0 = sshll.u32 %s1169_s5, 4  ;;  %s45_s0 = int_to_ptr.vmem [resolvable:$true] %s44_s0 }
   0xb   :  { %50 = dma.hbm_to_vmem [thread:$0]  %s43_s30, 2048, %s45_s0, [#allocation6], %s1167_s27, %s1167_s27, %s1168_s28  }
   0xc   :  { %1157 = dma.done.wait [#allocation3], 4096  }
   0xd   :  { %1158 = vsyncadd [#allocation3], 4294963200 }
   0xe   :  { %1159 = dma.done.wait [#allocation6], 4096  }
   0xf   :  { %1160 = vsyncadd [#allocation6], 4294963200  ;;  %v1011_v0 = vld [vmem:[#allocation5 + $0x38] sm:$0xff]  ;;  %v1010_v2 = vld [vmem:[#allocation5 + $0x30] sm:$0xff]  ;;  %s766_s10 = sshll.u32 %s1264_s4, 4  ;;  %s767_s10 = int_to_ptr.hbm [resolvable:$true] %s766_s10 }
  0x10   :  { %v1019_v1 = vld [vmem:[#allocation5 + $0x78] sm:$0xff]  ;;  %385 = vmatpush.bf16.msra.mxu0 %v1011_v0  ;;  %1020 = vmatpush.bf16.msra.mxu3 %v1011_v0  ;;  %v1018_v3 = vld [vmem:[#allocation5 + $0x70] sm:$0xff]  ;;  %v1009_v4 = vld [vmem:[#allocation5 + $0x28] sm:$0xff] }
  0x11   :  { %474 = vmatpush.bf16.msra.mxu1 %v1019_v1  ;;  %v1017_v5 = vld [vmem:[#allocation5 + $0x68] sm:$0xff]  ;;  %v1008_v6 = vld [vmem:[#allocation5 + $0x20] sm:$0xff]  ;;  %v1007_v8 = vld [vmem:[#allocation5 + $0x18] sm:$0xff] }
  0x12   :  { %v1016_v7 = vld [vmem:[#allocation5 + $0x60] sm:$0xff]  ;;  %v1015_v9 = vld [vmem:[#allocation5 + $0x58] sm:$0xff]  ;;  %v1006_v10 = vld [vmem:[#allocation5 + $0x10] sm:$0xff] }
  0x13   :  { %v1014_v11 = vld [vmem:[#allocation5 + $0x50] sm:$0xff]  ;;  %v1005_v12 = vld [vmem:[#allocation5 + $0x8] sm:$0xff]  ;;  %v1004_v14 = vld [vmem:[#allocation5] sm:$0xff] }
  0x14   :  { %386 = vmatpush.bf16.msra.mxu0 %v1010_v2  ;;  %1021 = vmatpush.bf16.msra.mxu3 %v1010_v2  ;;  %v1013_v13 = vld [vmem:[#allocation5 + $0x48] sm:$0xff]  ;;  %v782_v15 = vld [vmem:[#allocation2] sm:$0xf]  ;;  %v972_v20 = vld [vmem:[#allocation2 + $0x4] sm:$0xf] }
  0x15   :  { %475 = vmatpush.bf16.msra.mxu1 %v1018_v3  ;;  %v973_v16 = vld [vmem:[#allocation2 + $0x4] sm:$0xf0]  ;;  %v878_v17 = vld [vmem:[#allocation2 + $0xc0] sm:$0xf]  ;;  %v784_v21 = vld [vmem:[#allocation2 + $0x8] sm:$0xf0] }
  0x16   :  { %v997_v18 = vld [vmem:[#allocation2 + $0xc4] sm:$0xf0]  ;;  %v1012_v19 = vld [vmem:[#allocation5 + $0x40] sm:$0xff]  ;;  %v783_v22 = vor.u32 %v973_v16, %v782_v15  ;;  %v787_v24 = vor.u32 %v972_v20, %v784_v21  ;;  %v790_v25 = vld [vmem:[#allocation2 + $0x10] sm:$0xf] }
  0x17   :  { %v879_v23 = vor.u32 %v997_v18, %v878_v17  ;;  %v975_v26 = vld [vmem:[#allocation2 + $0x14] sm:$0xf0]  ;;  %v886_v27 = vld [vmem:[#allocation2 + $0xd0] sm:$0xf]  ;;  %v974_v29 = vld [vmem:[#allocation2 + $0x14] sm:$0xf] }
  0x18   :  { %387 = vmatpush.bf16.msra.mxu0 %v1009_v4  ;;  %1022 = vmatpush.bf16.msra.mxu3 %v1009_v4  ;;  %v999_v28 = vld [vmem:[#allocation2 + $0xd4] sm:$0xf0]  ;;  %v792_v30 = vld [vmem:[#allocation2 + $0x18] sm:$0xf0]  ;;  %v791_v31 = vor.u32 %v975_v26, %v790_v25  ;;  %v798_v34 = vld [vmem:[#allocation2 + $0x20] sm:$0xf] }
  0x19   :  { %476 = vmatpush.bf16.msra.mxu1 %v1017_v5  ;;  %v887_v32 = vor.u32 %v999_v28, %v886_v27  ;;  %v795_v33 = vor.u32 %v974_v29, %v792_v30  ;;  %v977_v35 = vld [vmem:[#allocation2 + $0x24] sm:$0xf0]  ;;  %v894_v36 = vld [vmem:[#allocation2 + $0xe0] sm:$0xf]  ;;  %v976_v38 = vld [vmem:[#allocation2 + $0x24] sm:$0xf] }
  0x1a   :  { %v1001_v37 = vld [vmem:[#allocation2 + $0xe4] sm:$0xf0]  ;;  %v800_v39 = vld [vmem:[#allocation2 + $0x28] sm:$0xf0]  ;;  %v799_v40 = vor.u32 %v977_v35, %v798_v34  ;;  %v806_v43 = vld [vmem:[#allocation2 + $0x30] sm:$0xf] }
  0x1b   :  { %v895_v41 = vor.u32 %v1001_v37, %v894_v36  ;;  %v803_v42 = vor.u32 %v976_v38, %v800_v39  ;;  %v979_v44 = vld [vmem:[#allocation2 + $0x34] sm:$0xf0]  ;;  %v902_v45 = vld [vmem:[#allocation2 + $0xf0] sm:$0xf]  ;;  %v978_v47 = vld [vmem:[#allocation2 + $0x34] sm:$0xf] }
  0x1c   :  { %388 = vmatpush.bf16.msra.mxu0 %v1008_v6  ;;  %1023 = vmatpush.bf16.msra.mxu3 %v1008_v6  ;;  %v1003_v46 = vld [vmem:[#allocation2 + $0xf4] sm:$0xf0]  ;;  %v808_v48 = vld [vmem:[#allocation2 + $0x38] sm:$0xf0]  ;;  %v807_v49 = vor.u32 %v979_v44, %v806_v43  ;;  %v814_v52 = vld [vmem:[#allocation2 + $0x40] sm:$0xf] }
  0x1d   :  { %477 = vmatpush.bf16.msra.mxu1 %v1016_v7  ;;  %v903_v50 = vor.u32 %v1003_v46, %v902_v45  ;;  %v811_v51 = vor.u32 %v978_v47, %v808_v48  ;;  %v981_v53 = vld [vmem:[#allocation2 + $0x44] sm:$0xf0]  ;;  %v996_v54 = vld [vmem:[#allocation2 + $0xc4] sm:$0xf]  ;;  %v880_v55 = vld [vmem:[#allocation2 + $0xc8] sm:$0xf0] }
  0x1e   :  { %v980_v56 = vld [vmem:[#allocation2 + $0x44] sm:$0xf]  ;;  %v816_v57 = vld [vmem:[#allocation2 + $0x48] sm:$0xf0]  ;;  %v815_v58 = vor.u32 %v981_v53, %v814_v52  ;;  %v883_v59 = vor.u32 %v996_v54, %v880_v55  ;;  %v578_v61 = vld [vmem:[#allocation7 + $0x78] sm:$0xff] }
  0x1f   :  { %v819_v60 = vor.u32 %v980_v56, %v816_v57  ;;  %v577_v62 = vld [vmem:[#allocation7 + $0x70] sm:$0xff]  ;;  %583 = vmatpush.msra.mxu2 %v578_v61  ;;  %v576_v63 = vld [vmem:[#allocation7 + $0x68] sm:$0xff]  ;;  %v575_v0 = vld [vmem:[#allocation7 + $0x60] sm:$0xff] }
  0x20   :  { %389 = vmatpush.bf16.msra.mxu0 %v1007_v8  ;;  %1024 = vmatpush.bf16.msra.mxu3 %v1007_v8  ;;  %v822_v2 = vld [vmem:[#allocation2 + $0x50] sm:$0xf]  ;;  %v998_v4 = vld [vmem:[#allocation2 + $0xd4] sm:$0xf]  ;;  %v824_v8 = vld [vmem:[#allocation2 + $0x58] sm:$0xf0] }
  0x21   :  { %478 = vmatpush.bf16.msra.mxu1 %v1015_v9  ;;  %584 = vmatpush.msra.mxu2 %v577_v62  ;;  %v573_v6 = vld [vmem:[#allocation7 + $0x50] sm:$0xff]  ;;  %v568_v16 = vld [vmem:[#allocation7 + $0x28] sm:$0xff]  ;;  %v567_v17 = vld [vmem:[#allocation7 + $0x20] sm:$0xff] }
  0x22   :  { %v569_v15 = vld [vmem:[#allocation7 + $0x30] sm:$0xff]  ;;  %v830_v18 = vld [vmem:[#allocation2 + $0x60] sm:$0xf]  ;;  %v985_v20 = vld [vmem:[#allocation2 + $0x64] sm:$0xf0] }
  0x23   :  { %585 = vmatpush.msra.mxu2 %v576_v63  ;;  %v1000_v21 = vld [vmem:[#allocation2 + $0xe4] sm:$0xf]  ;;  %v565_v25 = vld [vmem:[#allocation7 + $0x10] sm:$0xff]  ;;  %v831_v26 = vor.u32 %v985_v20, %v830_v18  ;;  %v564_v29 = vld [vmem:[#allocation7 + $0x8] sm:$0xff] }
  0x24   :  { %390 = vmatpush.bf16.msra.mxu0 %v1006_v10  ;;  %1025 = vmatpush.bf16.msra.mxu3 %v1006_v10  ;;  %v563_v30 = vld [vmem:[#allocation7] sm:$0xff]  ;;  %v904_v34 = vld [vmem:[#allocation2 + $0xf8] sm:$0xf0]  ;;  %v986_v35 = vld [vmem:[#allocation2 + $0x74] sm:$0xf] }
  0x25   :  { %479 = vmatpush.bf16.msra.mxu1 %v1014_v11  ;;  %586 = vmatpush.msra.mxu2 %v575_v0  ;;  %v840_v36 = vld [vmem:[#allocation2 + $0x78] sm:$0xf0]  ;;  %v848_v43 = vld [vmem:[#allocation2 + $0x88] sm:$0xf0]  ;;  %v854_v53 = vld [vmem:[#allocation2 + $0x90] sm:$0xf] }
  0x26   :  { %v843_v39 = vor.u32 %v986_v35, %v840_v36  ;;  %v991_v54 = vld [vmem:[#allocation2 + $0x94] sm:$0xf0]  ;;  %v990_v55 = vld [vmem:[#allocation2 + $0x94] sm:$0xf]  ;;  %v856_v56 = vld [vmem:[#allocation2 + $0x98] sm:$0xf0] }
  0x27   :  { %v995_v18 = vld [vmem:[#allocation2 + $0xb4] sm:$0xf0]  ;;  %v872_v20 = vld [vmem:[#allocation2 + $0xb8] sm:$0xf0] }
  0x28   :  { %391 = vmatpush.bf16.msra.mxu0 %v1005_v12  ;;  %1026 = vmatpush.bf16.msra.mxu3 %v1005_v12 }
  0x29   :  { %480 = vmatpush.bf16.msra.mxu1 %v1013_v13 }
  0x2c   :  { %392 = vmatpush.bf16.msra.mxu0 %v1004_v14  ;;  %1027 = vmatpush.bf16.msra.mxu3 %v1004_v14  ;;  %v570_v14 = vld [vmem:[#allocation7 + $0x38] sm:$0xff] }
  0x2d   :  { %481 = vmatpush.bf16.msra.mxu1 %v1012_v19 }
  0x2f   :  { %393 = vmatmul.bf16.vlgmr.msra.gmra.mxu0 %v783_v22  ;;  %453 = vmatmul.bf16.vlgmr.msra.gmra.mxu3 %v879_v23  ;;  %v896_v22 = vld [vmem:[#allocation2 + $0xe8] sm:$0xf0]  ;;  %v984_v23 = vld [vmem:[#allocation2 + $0x64] sm:$0xf] }
  0x30   :  { %1028 = vmatpush.bf16.msrb.mxu3 %v1019_v1  ;;  %482 = vmatmul.bf16.vlgmr.msra.gmra.mxu1 %v787_v24  ;;  %v574_v1 = vld [vmem:[#allocation7 + $0x58] sm:$0xff]  ;;  %v832_v24 = vld [vmem:[#allocation2 + $0x68] sm:$0xf0]  ;;  %v899_v27 = vor.u32 %v1000_v21, %v896_v22 }
  0x31   :  { %587 = vmatpush.msra.mxu2 %v574_v1  ;;  %v835_v28 = vor.u32 %v984_v23, %v832_v24 }
  0x33   :  { %588 = vmatpush.msra.mxu2 %v573_v6 }
  0x34   :  { %1029 = vmatpush.bf16.msrb.mxu3 %v1018_v3  ;;  %v983_v3 = vld [vmem:[#allocation2 + $0x54] sm:$0xf0] }
  0x35   :  { %v823_v10 = vor.u32 %v983_v3, %v822_v2  ;;  %v862_v3 = vld [vmem:[#allocation2 + $0xa0] sm:$0xf] }
  0x38   :  { %1030 = vmatpush.bf16.msrb.mxu3 %v1017_v5  ;;  %v888_v5 = vld [vmem:[#allocation2 + $0xd8] sm:$0xf0] }
  0x3c   :  { %1031 = vmatpush.bf16.msrb.mxu3 %v1016_v7  ;;  %v982_v7 = vld [vmem:[#allocation2 + $0x54] sm:$0xf] }
  0x3d   :  { %v827_v12 = vor.u32 %v982_v7, %v824_v8 }
  0x3f   :  { %398 = vmatmul.bf16.gmra.mxu0 %v791_v31  ;;  %458 = vmatmul.bf16.gmra.mxu3 %v887_v32  ;;  %v838_v31 = vld [vmem:[#allocation2 + $0x70] sm:$0xf]  ;;  %v987_v32 = vld [vmem:[#allocation2 + $0x74] sm:$0xf0] }
  0x40   :  { %1032 = vmatpush.bf16.msrb.mxu3 %v1015_v9  ;;  %487 = vmatmul.bf16.gmra.mxu1 %v795_v33  ;;  %v572_v9 = vld [vmem:[#allocation7 + $0x48] sm:$0xff]  ;;  %v1002_v33 = vld [vmem:[#allocation2 + $0xf4] sm:$0xf]  ;;  %v839_v37 = vor.u32 %v987_v32, %v838_v31 }
  0x41   :  { %589 = vmatpush.msra.mxu2 %v572_v9  ;;  %v907_v38 = vor.u32 %v1002_v33, %v904_v34 }
  0x44   :  { %1033 = vmatpush.bf16.msrb.mxu3 %v1014_v11  ;;  %v891_v11 = vor.u32 %v998_v4, %v888_v5  ;;  %v993_v4 = vld [vmem:[#allocation2 + $0xa4] sm:$0xf0]  ;;  %v992_v5 = vld [vmem:[#allocation2 + $0xa4] sm:$0xf] }
  0x45   :  { %v863_v8 = vor.u32 %v993_v4, %v862_v3 }
  0x48   :  { %1034 = vmatpush.bf16.msrb.mxu3 %v1013_v13  ;;  %v571_v13 = vld [vmem:[#allocation7 + $0x40] sm:$0xff] }
  0x49   :  { %590 = vmatpush.msra.mxu2 %v571_v13 }
  0x4b   :  { %591 = vmatpush.msra.mxu2 %v570_v14 }
  0x4c   :  { %1035 = vmatpush.bf16.msrb.mxu3 %v1012_v19  ;;  %v566_v19 = vld [vmem:[#allocation7 + $0x18] sm:$0xff] }
  0x4d   :  { %592 = vmatpush.msra.mxu2 %v569_v15 }
  0x4f   :  { %403 = vmatmul.bf16.gmra.mxu0 %v799_v40  ;;  %463 = vmatmul.bf16.gmra.mxu3 %v895_v41  ;;  %v846_v40 = vld [vmem:[#allocation2 + $0x80] sm:$0xf]  ;;  %v989_v41 = vld [vmem:[#allocation2 + $0x84] sm:$0xf0] }
  0x50   :  { %492 = vmatmul.bf16.gmra.mxu1 %v803_v42  ;;  %1036 = vmatpush.msra.mxu3 %v578_v61  ;;  %v988_v42 = vld [vmem:[#allocation2 + $0x84] sm:$0xf]  ;;  %v847_v44 = vor.u32 %v989_v41, %v846_v40 }
  0x51   :  { %593 = vmatpush.msra.mxu2 %v568_v16  ;;  %v851_v46 = vor.u32 %v988_v42, %v848_v43 }
  0x52   :  { %1037 = vmatpush.msra.mxu3 %v577_v62 }
  0x53   :  { %594 = vmatpush.msra.mxu2 %v567_v17 }
  0x54   :  { %1038 = vmatpush.msra.mxu3 %v576_v63 }
  0x55   :  { %595 = vmatpush.msra.mxu2 %v566_v19 }
  0x56   :  { %1039 = vmatpush.msra.mxu3 %v575_v0 }
  0x57   :  { %596 = vmatpush.msra.mxu2 %v565_v25 }
  0x58   :  { %1040 = vmatpush.msra.mxu3 %v574_v1 }
  0x59   :  { %597 = vmatpush.msra.mxu2 %v564_v29 }
  0x5a   :  { %1041 = vmatpush.msra.mxu3 %v573_v6  ;;  %v864_v6 = vld [vmem:[#allocation2 + $0xa8] sm:$0xf0] }
  0x5b   :  { %598 = vmatpush.msra.mxu2 %v563_v30 }
  0x5c   :  { %1042 = vmatpush.msra.mxu3 %v572_v9 }
  0x5e   :  { %1043 = vmatpush.msra.mxu3 %v571_v13 }
  0x5f   :  { %408 = vmatmul.bf16.gmra.mxu0 %v807_v49  ;;  %468 = vmatmul.bf16.gmra.mxu3 %v903_v50 }
  0x60   :  { %497 = vmatmul.bf16.gmra.mxu1 %v811_v51  ;;  %1044 = vmatpush.msra.mxu3 %v570_v14 }
  0x62   :  { %1045 = vmatpush.msra.mxu3 %v569_v15 }
  0x64   :  { %1046 = vmatpush.msra.mxu3 %v568_v16 }
  0x66   :  { %1047 = vmatpush.msra.mxu3 %v567_v17  ;;  %v870_v17 = vld [vmem:[#allocation2 + $0xb0] sm:$0xf] }
  0x67   :  { %v871_v22 = vor.u32 %v995_v18, %v870_v17 }
  0x68   :  { %1048 = vmatpush.msra.mxu3 %v566_v19  ;;  %v994_v19 = vld [vmem:[#allocation2 + $0xb4] sm:$0xf] }
  0x69   :  { %v875_v24 = vor.u32 %v994_v19, %v872_v20 }
  0x6a   :  { %1049 = vmatpush.msra.mxu3 %v565_v25 }
  0x6c   :  { %1050 = vmatpush.msra.mxu3 %v564_v29 }
  0x6e   :  { %1051 = vmatpush.msra.mxu3 %v563_v30 }
  0x6f   :  { %413 = vmatmul.bf16.gmra.mxu0 %v815_v58  ;;  %542 = vmatmul.bf16.vlgmr.msrb.gmra.mxu3 %v883_v59  ;;  %v855_v58 = vor.u32 %v991_v54, %v854_v53 }
  0x70   :  { %502 = vmatmul.bf16.gmra.mxu1 %v819_v60  ;;  %v859_v60 = vor.u32 %v990_v55, %v856_v56 }
  0x7f   :  { %418 = vmatmul.bf16.gmra.mxu0 %v823_v10  ;;  %547 = vmatmul.bf16.gmra.mxu3 %v891_v11  ;;  %v867_v10 = vor.u32 %v992_v5, %v864_v6 }
  0x80   :  { %507 = vmatmul.bf16.gmra.mxu1 %v827_v12 }
  0x8f   :  { %423 = vmatmul.bf16.gmra.mxu0 %v831_v26  ;;  %552 = vmatmul.bf16.gmra.mxu3 %v899_v27 }
  0x90   :  { %512 = vmatmul.bf16.gmra.mxu1 %v835_v28 }
  0x9f   :  { %428 = vmatmul.bf16.gmra.mxu0 %v839_v37  ;;  %557 = vmatmul.bf16.gmra.mxu3 %v907_v38 }
  0xa0   :  { %517 = vmatmul.bf16.gmra.mxu1 %v843_v39 }
  0xac   :  { %v394_v45 = vpop.f32.mrf.mxu0 }
  0xad   :  { %v483_v47 = vpop.f32.mrf.mxu1 }
  0xae   :  { %v484_v48 = vadd.f32 %v483_v47, %v394_v45 }
  0xaf   :  { %433 = vmatmul.bf16.gmra.mxu0 %v847_v44 }
  0xb0   :  { %522 = vmatmul.bf16.gmra.mxu1 %v851_v46  ;;  %599 = vmatmul.f32.vlgmr.msra.gmra.mxu2 %v484_v48 }
  0xb2   :  { %v1211_v49 = vpop.f32.mrf.mxu3 }
  0xb4   :  { %v396_v50 = vpop.f32.mrf.mxu0 }
  0xb5   :  { %v485_v51 = vpop.f32.mrf.mxu1 }
  0xb6   :  { %v486_v52 = vadd.f32 %v485_v51, %v396_v50 }
  0xb8   :  { %602 = vmatmul.f32.gmra.mxu2 %v486_v52 }
  0xba   :  { %v1213_v57 = vpop.f32.mrf.mxu3 }
  0xbc   :  { %v399_v59 = vpop.f32.mrf.mxu0 }
  0xbd   :  { %v488_v61 = vpop.f32.mrf.mxu1 }
  0xbe   :  { %v489_v62 = vadd.f32 %v488_v61, %v399_v59 }
  0xbf   :  { %438 = vmatmul.bf16.gmra.mxu0 %v855_v58 }
  0xc0   :  { %527 = vmatmul.bf16.gmra.mxu1 %v859_v60  ;;  %605 = vmatmul.f32.gmra.mxu2 %v489_v62 }
  0xc2   :  { %v459_v63 = vpop.f32.mrf.mxu3 }
  0xc4   :  { %v401_v0 = vpop.f32.mrf.mxu0 }
  0xc5   :  { %v490_v1 = vpop.f32.mrf.mxu1 }
  0xc6   :  { %v491_v2 = vadd.f32 %v490_v1, %v401_v0 }
  0xc8   :  { %608 = vmatmul.f32.gmra.mxu2 %v491_v2 }
  0xca   :  { %v461_v7 = vpop.f32.mrf.mxu3 }
  0xcc   :  { %v404_v9 = vpop.f32.mrf.mxu0 }
  0xcd   :  { %v493_v11 = vpop.f32.mrf.mxu1 }
  0xce   :  { %v494_v12 = vadd.f32 %v493_v11, %v404_v9  ;;  %v1220_v11 = vld [vmem:[%s1263_s3] ss:$0 sm:$0xff]  ;;  %s1170_s3 = smov [#allocation8]  }
  0xcf   :  { %443 = vmatmul.bf16.gmra.mxu0 %v863_v8  ;;  %s764_s7 = sshll.u32 %s1170_s3, 4  ;;  %s765_s7 = int_to_ptr.vmem [resolvable:$true] %s764_s7 }
  0xd0   :  { %532 = vmatmul.bf16.gmra.mxu1 %v867_v10  ;;  %611 = vmatmul.f32.gmra.mxu2 %v494_v12 }
  0xd2   :  { %v464_v13 = vpop.f32.mrf.mxu3 }
  0xd4   :  { %v406_v14 = vpop.f32.mrf.mxu0 }
  0xd5   :  { %v495_v15 = vpop.f32.mrf.mxu1 }
  0xd6   :  { %v496_v16 = vadd.f32 %v495_v15, %v406_v14 }
  0xd8   :  { %614 = vmatmul.f32.gmra.mxu2 %v496_v16 }
  0xda   :  { %v466_v21 = vpop.f32.mrf.mxu3 }
  0xdc   :  { %v409_v23 = vpop.f32.mrf.mxu0 }
  0xdd   :  { %v498_v25 = vpop.f32.mrf.mxu1 }
  0xde   :  { %v499_v26 = vadd.f32 %v498_v25, %v409_v23 }
  0xdf   :  { %448 = vmatmul.bf16.gmra.mxu0 %v871_v22 }
  0xe0   :  { %537 = vmatmul.bf16.gmra.mxu1 %v875_v24  ;;  %617 = vmatmul.f32.gmra.mxu2 %v499_v26 }
  0xe2   :  { %v469_v27 = vpop.f32.mrf.mxu3 }
  0xe4   :  { %v411_v28 = vpop.f32.mrf.mxu0 }
  0xe5   :  { %v500_v29 = vpop.f32.mrf.mxu1 }
  0xe6   :  { %v501_v30 = vadd.f32 %v500_v29, %v411_v28 }
  0xe8   :  { %620 = vmatmul.f32.gmra.mxu2 %v501_v30 }
  0xea   :  { %v471_v31 = vpop.f32.mrf.mxu3 }
  0xec   :  { %v414_v32 = vpop.f32.mrf.mxu0 }
  0xed   :  { %v503_v33 = vpop.f32.mrf.mxu1 }
  0xee   :  { %v504_v34 = vadd.f32 %v503_v33, %v414_v32 }
  0xf0   :  { %623 = vmatmul.f32.gmra.mxu2 %v504_v34 }
  0xf2   :  { %v543_v35 = vpop.f32.mrf.mxu3 }
  0xf3   :  { %v544_v36 = vadd.f32 %v543_v35, %v1211_v49 }
  0xf4   :  { %v416_v37 = vpop.f32.mrf.mxu0 }
  0xf5   :  { %v505_v38 = vpop.f32.mrf.mxu1  ;;  %671 = vmatmul.f32.vlgmr.msra.gmra.mxu3 %v544_v36 }
  0xf6   :  { %v506_v39 = vadd.f32 %v505_v38, %v416_v37 }
  0xf8   :  { %626 = vmatmul.f32.gmra.mxu2 %v506_v39 }
  0xfa   :  { %v545_v40 = vpop.f32.mrf.mxu3 }
  0xfb   :  { %v546_v41 = vadd.f32 %v545_v40, %v1213_v57 }
  0xfc   :  { %v419_v42 = vpop.f32.mrf.mxu0 }
  0xfd   :  { %v508_v43 = vpop.f32.mrf.mxu1  ;;  %674 = vmatmul.f32.gmra.mxu3 %v546_v41 }
  0xfe   :  { %v509_v44 = vadd.f32 %v508_v43, %v419_v42 }
 0x100   :  { %629 = vmatmul.f32.gmra.mxu2 %v509_v44 }
 0x102   :  { %v548_v45 = vpop.f32.mrf.mxu3 }
 0x103   :  { %v549_v46 = vadd.f32 %v548_v45, %v459_v63 }
 0x104   :  { %v421_v47 = vpop.f32.mrf.mxu0 }
 0x105   :  { %v510_v48 = vpop.f32.mrf.mxu1  ;;  %677 = vmatmul.f32.gmra.mxu3 %v549_v46 }
 0x106   :  { %v511_v50 = vadd.f32 %v510_v48, %v421_v47 }
 0x108   :  { %632 = vmatmul.f32.gmra.mxu2 %v511_v50 }
 0x10a   :  { %v550_v49 = vpop.f32.mrf.mxu3 }
 0x10b   :  { %v551_v51 = vadd.f32 %v550_v49, %v461_v7 }
 0x10c   :  { %v424_v52 = vpop.f32.mrf.mxu0 }
 0x10d   :  { %v513_v53 = vpop.f32.mrf.mxu1  ;;  %680 = vmatmul.f32.gmra.mxu3 %v551_v51 }
 0x10e   :  { %v514_v54 = vadd.f32 %v513_v53, %v424_v52 }
 0x110   :  { %635 = vmatmul.f32.gmra.mxu2 %v514_v54 }
 0x112   :  { %v553_v55 = vpop.f32.mrf.mxu3 }
 0x113   :  { %v554_v56 = vadd.f32 %v553_v55, %v464_v13 }
 0x114   :  { %v426_v57 = vpop.f32.mrf.mxu0 }
 0x115   :  { %v515_v58 = vpop.f32.mrf.mxu1  ;;  %683 = vmatmul.f32.gmra.mxu3 %v554_v56 }
 0x116   :  { %v516_v59 = vadd.f32 %v515_v58, %v426_v57 }
 0x118   :  { %638 = vmatmul.f32.gmra.mxu2 %v516_v59 }
 0x11a   :  { %v555_v60 = vpop.f32.mrf.mxu3 }
 0x11b   :  { %v556_v61 = vadd.f32 %v555_v60, %v466_v21 }
 0x11c   :  { %v429_v62 = vpop.f32.mrf.mxu0 }
 0x11d   :  { %v518_v63 = vpop.f32.mrf.mxu1  ;;  %686 = vmatmul.f32.gmra.mxu3 %v556_v61 }
 0x11e   :  { %v519_v0 = vadd.f32 %v518_v63, %v429_v62 }
 0x120   :  { %641 = vmatmul.f32.gmra.mxu2 %v519_v0 }
 0x122   :  { %v558_v1 = vpop.f32.mrf.mxu3 }
 0x123   :  { %v559_v2 = vadd.f32 %v558_v1, %v469_v27 }
 0x124   :  { %v431_v3 = vpop.f32.mrf.mxu0 }
 0x125   :  { %v520_v4 = vpop.f32.mrf.mxu1  ;;  %689 = vmatmul.f32.gmra.mxu3 %v559_v2 }
 0x126   :  { %v521_v5 = vadd.f32 %v520_v4, %v431_v3 }
 0x128   :  { %644 = vmatmul.f32.gmra.mxu2 %v521_v5 }
 0x12a   :  { %v560_v6 = vpop.f32.mrf.mxu3 }
 0x12b   :  { %v561_v7 = vadd.f32 %v560_v6, %v471_v31 }
 0x12c   :  { %v434_v8 = vpop.f32.mrf.mxu0 }
 0x12d   :  { %v523_v9 = vpop.f32.mrf.mxu1  ;;  %692 = vmatmul.f32.gmra.mxu3 %v561_v7 }
 0x12e   :  { %v524_v10 = vadd.f32 %v523_v9, %v434_v8 }
 0x130   :  { %647 = vmatmul.f32.gmra.mxu2 %v524_v10 }
 0x133   :  { %v600_v12 = vpop.f32.mrf.mxu2 }
 0x134   :  { %v601_v13 = vadd.f32 %v1220_v11, %v600_v12  ;;  %v436_v14 = vpop.f32.mrf.mxu0 }
 0x135   :  { %v525_v15 = vpop.f32.mrf.mxu1 }
 0x136   :  { %v696_v16 = vmax.f32 %v601_v13, 0.0  ;;  %v526_v17 = vadd.f32 %v525_v15, %v436_v14 }
 0x138   :  { %728 = vst [vmem:[#allocation8] sm:$0xff] %v696_v16  ;;  %650 = vmatmul.f32.gmra.mxu2 %v526_v17 }
 0x13b   :  { %v603_v18 = vpop.f32.mrf.mxu2 }
 0x13c   :  { %v604_v19 = vadd.f32 %v1220_v11, %v603_v18  ;;  %v439_v20 = vpop.f32.mrf.mxu0 }
 0x13d   :  { %v528_v21 = vpop.f32.mrf.mxu1 }
 0x13e   :  { %v697_v22 = vmax.f32 %v604_v19, 0.0  ;;  %v529_v23 = vadd.f32 %v528_v21, %v439_v20 }
 0x140   :  { %729 = vst [vmem:[#allocation8 + $0x8] sm:$0xff] %v697_v22  ;;  %653 = vmatmul.f32.gmra.mxu2 %v529_v23 }
 0x143   :  { %v606_v24 = vpop.f32.mrf.mxu2 }
 0x144   :  { %v607_v25 = vadd.f32 %v1220_v11, %v606_v24  ;;  %v441_v26 = vpop.f32.mrf.mxu0 }
 0x145   :  { %v530_v27 = vpop.f32.mrf.mxu1 }
 0x146   :  { %v698_v28 = vmax.f32 %v607_v25, 0.0  ;;  %v531_v29 = vadd.f32 %v530_v27, %v441_v26 }
 0x148   :  { %730 = vst [vmem:[#allocation8 + $0x10] sm:$0xff] %v698_v28  ;;  %656 = vmatmul.f32.gmra.mxu2 %v531_v29 }
 0x14b   :  { %v609_v30 = vpop.f32.mrf.mxu2 }
 0x14c   :  { %v610_v31 = vadd.f32 %v1220_v11, %v609_v30  ;;  %v444_v32 = vpop.f32.mrf.mxu0 }
 0x14d   :  { %v533_v33 = vpop.f32.mrf.mxu1 }
 0x14e   :  { %v699_v34 = vmax.f32 %v610_v31, 0.0  ;;  %v534_v35 = vadd.f32 %v533_v33, %v444_v32 }
 0x150   :  { %731 = vst [vmem:[#allocation8 + $0x18] sm:$0xff] %v699_v34  ;;  %659 = vmatmul.f32.gmra.mxu2 %v534_v35 }
 0x153   :  { %v612_v36 = vpop.f32.mrf.mxu2 }
 0x154   :  { %v613_v37 = vadd.f32 %v1220_v11, %v612_v36  ;;  %v446_v38 = vpop.f32.mrf.mxu0 }
 0x155   :  { %v535_v39 = vpop.f32.mrf.mxu1 }
 0x156   :  { %v700_v40 = vmax.f32 %v613_v37, 0.0  ;;  %v536_v41 = vadd.f32 %v535_v39, %v446_v38 }
 0x158   :  { %732 = vst [vmem:[#allocation8 + $0x20] sm:$0xff] %v700_v40  ;;  %662 = vmatmul.f32.gmra.mxu2 %v536_v41 }
 0x15b   :  { %v615_v42 = vpop.f32.mrf.mxu2 }
 0x15c   :  { %v616_v43 = vadd.f32 %v1220_v11, %v615_v42  ;;  %v449_v44 = vpop.f32.mrf.mxu0 }
 0x15d   :  { %v538_v45 = vpop.f32.mrf.mxu1 }
 0x15e   :  { %v701_v46 = vmax.f32 %v616_v43, 0.0  ;;  %v539_v47 = vadd.f32 %v538_v45, %v449_v44 }
 0x160   :  { %733 = vst [vmem:[#allocation8 + $0x28] sm:$0xff] %v701_v46  ;;  %665 = vmatmul.f32.gmra.mxu2 %v539_v47 }
 0x163   :  { %v618_v48 = vpop.f32.mrf.mxu2 }
 0x164   :  { %v619_v50 = vadd.f32 %v1220_v11, %v618_v48  ;;  %v451_v49 = vpop.f32.mrf.mxu0 }
 0x165   :  { %v540_v51 = vpop.f32.mrf.mxu1 }
 0x166   :  { %v702_v52 = vmax.f32 %v619_v50, 0.0  ;;  %v541_v53 = vadd.f32 %v540_v51, %v451_v49 }
 0x168   :  { %734 = vst [vmem:[#allocation8 + $0x30] sm:$0xff] %v702_v52  ;;  %668 = vmatmul.f32.gmra.mxu2 %v541_v53 }
 0x16b   :  { %v621_v54 = vpop.f32.mrf.mxu2 }
 0x16c   :  { %v622_v55 = vadd.f32 %v1220_v11, %v621_v54 }
 0x16e   :  { %v703_v56 = vmax.f32 %v622_v55, 0.0 }
 0x170   :  { %735 = vst [vmem:[#allocation8 + $0x38] sm:$0xff] %v703_v56 }
 0x173   :  { %v624_v57 = vpop.f32.mrf.mxu2 }
 0x174   :  { %v625_v58 = vadd.f32 %v1220_v11, %v624_v57 }
 0x176   :  { %v704_v59 = vmax.f32 %v625_v58, 0.0 }
 0x178   :  { %736 = vst [vmem:[#allocation8 + $0x40] sm:$0xff] %v704_v59  ;;  %v672_v60 = vpop.f32.mrf.mxu3 }
 0x179   :  { %v673_v61 = vadd.f32 %v1220_v11, %v672_v60 }
 0x17b   :  { %v720_v62 = vmax.f32 %v673_v61, 0.0  ;;  %v627_v63 = vpop.f32.mrf.mxu2 }
 0x17c   :  { %v628_v0 = vadd.f32 %v1220_v11, %v627_v63 }
 0x17d   :  { %752 = vst [vmem:[#allocation8 + $0xc0] sm:$0xff] %v720_v62 }
 0x17e   :  { %v705_v1 = vmax.f32 %v628_v0, 0.0 }
 0x180   :  { %737 = vst [vmem:[#allocation8 + $0x48] sm:$0xff] %v705_v1  ;;  %v675_v2 = vpop.f32.mrf.mxu3 }
 0x181   :  { %v676_v3 = vadd.f32 %v1220_v11, %v675_v2 }
 0x183   :  { %v721_v4 = vmax.f32 %v676_v3, 0.0  ;;  %v630_v5 = vpop.f32.mrf.mxu2 }
 0x184   :  { %v631_v6 = vadd.f32 %v1220_v11, %v630_v5 }
 0x185   :  { %753 = vst [vmem:[#allocation8 + $0xc8] sm:$0xff] %v721_v4 }
 0x186   :  { %v706_v7 = vmax.f32 %v631_v6, 0.0 }
 0x188   :  { %738 = vst [vmem:[#allocation8 + $0x50] sm:$0xff] %v706_v7  ;;  %v678_v8 = vpop.f32.mrf.mxu3 }
 0x189   :  { %v679_v9 = vadd.f32 %v1220_v11, %v678_v8 }
 0x18b   :  { %v722_v10 = vmax.f32 %v679_v9, 0.0  ;;  %v633_v12 = vpop.f32.mrf.mxu2 }
 0x18c   :  { %v634_v13 = vadd.f32 %v1220_v11, %v633_v12 }
 0x18d   :  { %754 = vst [vmem:[#allocation8 + $0xd0] sm:$0xff] %v722_v10 }
 0x18e   :  { %v707_v14 = vmax.f32 %v634_v13, 0.0 }
 0x190   :  { %739 = vst [vmem:[#allocation8 + $0x58] sm:$0xff] %v707_v14  ;;  %v681_v15 = vpop.f32.mrf.mxu3 }
 0x191   :  { %v682_v16 = vadd.f32 %v1220_v11, %v681_v15 }
 0x193   :  { %v723_v17 = vmax.f32 %v682_v16, 0.0  ;;  %v636_v18 = vpop.f32.mrf.mxu2 }
 0x194   :  { %v637_v19 = vadd.f32 %v1220_v11, %v636_v18 }
 0x195   :  { %755 = vst [vmem:[#allocation8 + $0xd8] sm:$0xff] %v723_v17 }
 0x196   :  { %v708_v20 = vmax.f32 %v637_v19, 0.0 }
 0x198   :  { %740 = vst [vmem:[#allocation8 + $0x60] sm:$0xff] %v708_v20  ;;  %v684_v21 = vpop.f32.mrf.mxu3 }
 0x199   :  { %v685_v22 = vadd.f32 %v1220_v11, %v684_v21 }
 0x19b   :  { %v724_v23 = vmax.f32 %v685_v22, 0.0  ;;  %v639_v24 = vpop.f32.mrf.mxu2 }
 0x19c   :  { %v640_v25 = vadd.f32 %v1220_v11, %v639_v24 }
 0x19d   :  { %756 = vst [vmem:[#allocation8 + $0xe0] sm:$0xff] %v724_v23 }
 0x19e   :  { %v709_v26 = vmax.f32 %v640_v25, 0.0 }
 0x1a0   :  { %741 = vst [vmem:[#allocation8 + $0x68] sm:$0xff] %v709_v26  ;;  %v687_v27 = vpop.f32.mrf.mxu3 }
 0x1a1   :  { %v688_v28 = vadd.f32 %v1220_v11, %v687_v27 }
 0x1a3   :  { %v725_v29 = vmax.f32 %v688_v28, 0.0  ;;  %v642_v30 = vpop.f32.mrf.mxu2 }
 0x1a4   :  { %v643_v31 = vadd.f32 %v1220_v11, %v642_v30 }
 0x1a5   :  { %757 = vst [vmem:[#allocation8 + $0xe8] sm:$0xff] %v725_v29 }
 0x1a6   :  { %v710_v32 = vmax.f32 %v643_v31, 0.0 }
 0x1a8   :  { %742 = vst [vmem:[#allocation8 + $0x70] sm:$0xff] %v710_v32  ;;  %v690_v33 = vpop.f32.mrf.mxu3 }
 0x1a9   :  { %v691_v34 = vadd.f32 %v1220_v11, %v690_v33 }
 0x1ab   :  { %v726_v35 = vmax.f32 %v691_v34, 0.0  ;;  %v645_v36 = vpop.f32.mrf.mxu2 }
 0x1ac   :  { %v646_v37 = vadd.f32 %v1220_v11, %v645_v36 }
 0x1ad   :  { %758 = vst [vmem:[#allocation8 + $0xf0] sm:$0xff] %v726_v35 }
 0x1ae   :  { %v711_v38 = vmax.f32 %v646_v37, 0.0 }
 0x1b0   :  { %743 = vst [vmem:[#allocation8 + $0x78] sm:$0xff] %v711_v38  ;;  %v693_v39 = vpop.f32.mrf.mxu3 }
 0x1b1   :  { %v694_v40 = vadd.f32 %v1220_v11, %v693_v39 }
 0x1b3   :  { %v727_v41 = vmax.f32 %v694_v40, 0.0  ;;  %v648_v42 = vpop.f32.mrf.mxu2 }
 0x1b4   :  { %v649_v43 = vadd.f32 %v1220_v11, %v648_v42 }
 0x1b5   :  { %759 = vst [vmem:[#allocation8 + $0xf8] sm:$0xff] %v727_v41 }
 0x1b6   :  { %v712_v44 = vmax.f32 %v649_v43, 0.0 }
 0x1b8   :  { %744 = vst [vmem:[#allocation8 + $0x80] sm:$0xff] %v712_v44 }
 0x1bb   :  { %v651_v45 = vpop.f32.mrf.mxu2 }
 0x1bc   :  { %v652_v46 = vadd.f32 %v1220_v11, %v651_v45 }
 0x1be   :  { %v713_v47 = vmax.f32 %v652_v46, 0.0 }
 0x1c0   :  { %745 = vst [vmem:[#allocation8 + $0x88] sm:$0xff] %v713_v47 }
 0x1c3   :  { %v654_v48 = vpop.f32.mrf.mxu2 }
 0x1c4   :  { %v655_v50 = vadd.f32 %v1220_v11, %v654_v48 }
 0x1c6   :  { %v714_v49 = vmax.f32 %v655_v50, 0.0 }
 0x1c8   :  { %746 = vst [vmem:[#allocation8 + $0x90] sm:$0xff] %v714_v49 }
 0x1cb   :  { %v657_v51 = vpop.f32.mrf.mxu2 }
 0x1cc   :  { %v658_v52 = vadd.f32 %v1220_v11, %v657_v51 }
 0x1ce   :  { %v715_v53 = vmax.f32 %v658_v52, 0.0 }
 0x1d0   :  { %747 = vst [vmem:[#allocation8 + $0x98] sm:$0xff] %v715_v53 }
 0x1d3   :  { %v660_v54 = vpop.f32.mrf.mxu2 }
 0x1d4   :  { %v661_v55 = vadd.f32 %v1220_v11, %v660_v54 }
 0x1d6   :  { %v716_v56 = vmax.f32 %v661_v55, 0.0 }
 0x1d8   :  { %748 = vst [vmem:[#allocation8 + $0xa0] sm:$0xff] %v716_v56 }
 0x1db   :  { %v663_v57 = vpop.f32.mrf.mxu2 }
 0x1dc   :  { %v664_v58 = vadd.f32 %v1220_v11, %v663_v57 }
 0x1de   :  { %v717_v59 = vmax.f32 %v664_v58, 0.0 }
 0x1e0   :  { %749 = vst [vmem:[#allocation8 + $0xa8] sm:$0xff] %v717_v59 }
 0x1e3   :  { %v666_v60 = vpop.f32.mrf.mxu2 }
 0x1e4   :  { %v667_v61 = vadd.f32 %v1220_v11, %v666_v60 }
 0x1e6   :  { %v718_v62 = vmax.f32 %v667_v61, 0.0 }
 0x1e8   :  { %750 = vst [vmem:[#allocation8 + $0xb0] sm:$0xff] %v718_v62 }
 0x1eb   :  { %v669_v63 = vpop.f32.mrf.mxu2 }
 0x1ec   :  { %v670_v0 = vadd.f32 %v1220_v11, %v669_v63 }
 0x1ee   :  { %v719_v1 = vmax.f32 %v670_v0, 0.0 }
 0x1f0   :  { %751 = vst [vmem:[#allocation8 + $0xb8] sm:$0xff] %v719_v1 }
 0x1f1   :  { %772 = dma.vmem_to_hbm [thread:$0]  %s765_s7, 4096, %s767_s10, [#allocation4], %s1167_s27, %s1167_s27, %s1168_s28  }
 0x1f2   :  { %1161 = dma.done.wait [#allocation4], 4096  }
 0x1f3   :  { %1162 = vsyncadd [#allocation4], 4294963200 }
 0x1f4   :  { %777 = vsyncpa [#allocation3], 1 }
 0x1f5   :  { %778 = vsyncpa [#allocation6], 1 }
 0x1f6   :  { %779 = vsyncpa [#allocation4], 1 }

</bundles_post_ra>
